<compile_context>
chip_gen: v6e
topology: v6e:2x2x1
jax: 0.10.0
libtpu: 0.0.40
codegen_flags: <defaults>
</compile_context>

<pallas_src>
import functools
import numpy as np

import jax
import jax.numpy as jnp
from jax.experimental import pallas as pl
from jax.experimental.pallas import tpu as pltpu


_HALF_LOG_2PI = 0.5 * float(np.log(2.0 * np.pi))


def _round_up(x, m):
    return ((x + m - 1) // m) * m


def _choose_tile(dim, tile_max, align):
    """Return (padded_dim, tile) with padded_dim % tile == 0 and TPU-friendly sizes."""
    padded = _round_up(dim, align)
    if padded <= tile_max:
        return padded, padded          # single tile == full (padded) dim
    return _round_up(dim, tile_max), tile_max


def _pad_to(x, shape):
    pads = [(0, s - d) for d, s in zip(x.shape, shape)]
    if all(p == (0, 0) for p in pads):
        return x
    return jnp.pad(x, pads)


def _stable_softplus(x):
    # log(1 + exp(x)) without overflow; a single EUP exp (+ log1p) per element.
    return jnp.maximum(x, 0.0) + jnp.log1p(jnp.exp(-jnp.abs(x)))


def _vmem_limit_bytes(tm, tn, tk):
    # Double-buffered inputs (X tile + 3 W-shaped tiles + 3 bias rows), output tile,
    # plus the f32 accumulator scratch.  Clamp into a range safe on v5e/v6e/v7x.
    est = 4 * (2 * (tm * tk + 3 * tk * tn + 3 * tn + tm * tn + 8) + tm * tn)
    return int(min(max(2 * est, 32 * 1024 * 1024), 48 * 1024 * 1024))


# --------------------------------------------------------------------------------------
# Kernels
# --------------------------------------------------------------------------------------

def _bbn_train_kernel(sigma_prior,
                      x_ref, wmu_ref, wls_ref, epsw_ref, bmu_ref, bls_ref, epsb_ref,
                      out_ref, lpw_ref, lqw_ref,
                      acc_ref):
    i = pl.program_id(0)            # batch (m) tile
    k = pl.program_id(2)            # reduction (n_input) tile
    nk = pl.num_programs(2)

    # Reparameterized weight tile (needed on every grid step for the matmul).
    wls = wls_ref[...]
    d_w = _stable_softplus(wls) * epsw_ref[...]       # == W - W_mu, exactly
    w = wmu_ref[...] + d_w

    @pl.when(k == 0)
    def _init():
        acc_ref[...] = jnp.zeros_like(acc_ref)
        lpw_ref[...] = jnp.zeros_like(lpw_ref)
        lqw_ref[...] = jnp.zeros_like(lqw_ref)

    acc_ref[...] += jnp.dot(x_ref[...], w, preferred_element_type=jnp.float32)

    # KL partial sums depend only on the (k, j) weight tile -> compute them once, on the
    # first batch tile.  Constant terms are added at trace time in the wrapper with the
    # TRUE element counts, so zero padding contributes exactly nothing here.
    inv_2s2 = np.float32(1.0 / (2.0 * sigma_prior * sigma_prior))

    @pl.when(i == 0)
    def _kl_weights():
        lpw_ref[...] += jnp.sum(w * w, keepdims=True) * (-inv_2s2)
        lqw_ref[...] += jnp.sum(-wls - 0.5 * (d_w * d_w) * jnp.exp(-2.0 * wls),
                                keepdims=True)

    @pl.when((i == 0) & (k == 0))
    def _kl_bias():
        bls = bls_ref[...]
        d_b = _stable_softplus(bls) * epsb_ref[...]
        b = bmu_ref[...] + d_b
        lpw_ref[...] += jnp.sum(b * b, keepdims=True) * (-inv_2s2)
        lqw_ref[...] += jnp.sum(-bls - 0.5 * (d_b * d_b) * jnp.exp(-2.0 * bls),
                                keepdims=True)

    @pl.when(k == nk - 1)
    def _finalize():
        b = bmu_ref[...] + _stable_softplus(bls_ref[...]) * epsb_ref[...]
        out_ref[...] = (acc_ref[...] + b).astype(out_ref.dtype)


def _bbn_infer_kernel(x_ref, wmu_ref, bmu_ref, out_ref, acc_ref):
    k = pl.program_id(2)
    nk = pl.num_programs(2)

    @pl.when(k == 0)
    def _init():
        acc_ref[...] = jnp.zeros_like(acc_ref)

    acc_ref[...] += jnp.dot(x_ref[...], wmu_ref[...], preferred_element_type=jnp.float32)

    @pl.when(k == nk - 1)
    def _finalize():
        out_ref[...] = (acc_ref[...] + bmu_ref[...]).astype(out_ref.dtype)


# --------------------------------------------------------------------------------------
# Wrappers
# --------------------------------------------------------------------------------------

def bbn_layer_forward(X, W_mu, W_logsigma, b_mu, b_logsigma, eps_W, eps_b, sigma_prior,
                      *, tm_max=256, tn_max=512, tk_max=512):
    """Training-path forward. Returns (output, lpw, lqw)."""
    X = jnp.asarray(X, jnp.float32)
    W_mu = jnp.asarray(W_mu, jnp.float32)
    W_logsigma = jnp.asarray(W_logsigma, jnp.float32)
    eps_W = jnp.asarray(eps_W, jnp.float32)
    b_mu2 = jnp.asarray(b_mu, jnp.float32).reshape(1, -1)
    b_ls2 = jnp.asarray(b_logsigma, jnp.float32).reshape(1, -1)
    eps_b2 = jnp.asarray(eps_b, jnp.float32).reshape(1, -1)

    batch, n_input = X.shape
    n_output = W_mu.shape[1]

    Mp, tm = _choose_tile(batch, tm_max, 8)
    Kp, tk = _choose_tile(n_input, tk_max, 8)
    Np, tn = _choose_tile(n_output, tn_max, 128)      # lane-dense output tiles
    gm, gn, gk = Mp // tm, Np // tn, Kp // tk

    Xp = _pad_to(X, (Mp, Kp))
    Wmu_p = _pad_to(W_mu, (Kp, Np))
    Wls_p = _pad_to(W_logsigma, (Kp, Np))
    epsW_p = _pad_to(eps_W, (Kp, Np))
    bmu_p = _pad_to(b_mu2, (1, Np))
    bls_p = _pad_to(b_ls2, (1, Np))
    epsb_p = _pad_to(eps_b2, (1, Np))

    kernel = functools.partial(_bbn_train_kernel, float(sigma_prior))

    w_spec = pl.BlockSpec((tk, tn), lambda i, j, k: (k, j))
    b_spec = pl.BlockSpec((1, tn), lambda i, j, k: (0, j))
    # Per-(m, n) KL partials: block index depends on both parallel grid axes -> no
    # cross-core write collisions under megacore sharding; only row i == 0 is meaningful.
    kl_spec = pl.BlockSpec((None, None, 1, 1), lambda i, j, k: (i, j, 0, 0))

    out_p, lpw_part, lqw_part = pl.pallas_call(
        kernel,
        out_shape=(jax.ShapeDtypeStruct((Mp, Np), jnp.float32),
                   jax.ShapeDtypeStruct((gm, gn, 1, 1), jnp.float32),
                   jax.ShapeDtypeStruct((gm, gn, 1, 1), jnp.float32)),
        grid_spec=pltpu.PrefetchScalarGridSpec(
            num_scalar_prefetch=0,
            grid=(gm, gn, gk),
            in_specs=[pl.BlockSpec((tm, tk), lambda i, j, k: (i, k)),
                      w_spec, w_spec, w_spec, b_spec, b_spec, b_spec],
            out_specs=(pl.BlockSpec((tm, tn), lambda i, j, k: (i, j)),
                       kl_spec, kl_spec),
            scratch_shapes=[pltpu.VMEM((tm, tn), jnp.float32)]),
        compiler_params=pltpu.CompilerParams(
            dimension_semantics=("parallel", "parallel", "arbitrary"),
            vmem_limit_bytes=_vmem_limit_bytes(tm, tn, tk)),
    )(Xp, Wmu_p, Wls_p, epsW_p, bmu_p, bls_p, epsb_p)

    out = out_p[:batch, :n_output]

    # Trace-time constants use the TRUE (unpadded) element counts.
    n_elems = n_input * n_output + n_output
    const_p = np.float32(n_elems * (-_HALF_LOG_2PI - np.log(abs(float(sigma_prior)))))
    const_q = np.float32(-n_elems * _HALF_LOG_2PI)
    lpw = const_p + jnp.sum(lpw_part[0])
    lqw = const_q + jnp.sum(lqw_part[0])
    return out, lpw, lqw


def bbn_layer_infer(X, W_mu, b_mu, *, tm_max=256, tn_max=512, tk_max=512):
    """Infer-path forward: X @ W_mu + b_mu."""
    X = jnp.asarray(X, jnp.float32)
    W_mu = jnp.asarray(W_mu, jnp.float32)
    b_mu2 = jnp.asarray(b_mu, jnp.float32).reshape(1, -1)

    batch, n_input = X.shape
    n_output = W_mu.shape[1]
    Mp, tm = _choose_tile(batch, tm_max, 8)
    Kp, tk = _choose_tile(n_input, tk_max, 8)
    Np, tn = _choose_tile(n_output, tn_max, 128)
    gm, gn, gk = Mp // tm, Np // tn, Kp // tk

    Xp = _pad_to(X, (Mp, Kp))
    Wp = _pad_to(W_mu, (Kp, Np))
    bp = _pad_to(b_mu2, (1, Np))

    out_p = pl.pallas_call(
        _bbn_infer_kernel,
        out_shape=jax.ShapeDtypeStruct((Mp, Np), jnp.float32),
        grid_spec=pltpu.PrefetchScalarGridSpec(
            num_scalar_prefetch=0,
            grid=(gm, gn, gk),
            in_specs=[pl.BlockSpec((tm, tk), lambda i, j, k: (i, k)),
                      pl.BlockSpec((tk, tn), lambda i, j, k: (k, j)),
                      pl.BlockSpec((1, tn), lambda i, j, k: (0, j))],
            out_specs=pl.BlockSpec((tm, tn), lambda i, j, k: (i, j)),
            scratch_shapes=[pltpu.VMEM((tm, tn), jnp.float32)]),
        compiler_params=pltpu.CompilerParams(
            dimension_semantics=("parallel", "parallel", "arbitrary"),
            vmem_limit_bytes=_vmem_limit_bytes(tm, tn, tk)),
    )(Xp, Wp, bp)
    return out_p[:batch, :n_output]


# --------------------------------------------------------------------------------------
# Reference + tests
# --------------------------------------------------------------------------------------

def _reference_forward(X, W_mu, W_logsigma, b_mu, b_logsigma, eps_W, eps_b, sigma_prior):
    """Plain-JAX reference mirroring the PyTorch semantics."""
    W = W_mu + jnp.log1p(jnp.exp(W_logsigma)) * eps_W
    b = b_mu + jnp.log1p(jnp.exp(b_logsigma)) * eps_b
    out = jnp.dot(X, W, precision="highest") + b[None, :]

    def log_gauss(x, mu, sigma):
        return (-_HALF_LOG_2PI - np.log(abs(sigma))) - (x - mu) ** 2 / (2 * sigma ** 2)

    def log_gauss_logsigma(x, mu, logsigma):
        return -_HALF_LOG_2PI - logsigma - (x - mu) ** 2 / (2 * jnp.exp(logsigma) ** 2)

    lpw = jnp.sum(log_gauss(W, 0.0, sigma_prior)) + jnp.sum(log_gauss(b, 0.0, sigma_prior))
    lqw = (jnp.sum(log_gauss_logsigma(W, W_mu, W_logsigma))
           + jnp.sum(log_gauss_logsigma(b, b_mu, b_logsigma)))
    return out, lpw, lqw


def _run_case(key, batch, n_input, n_output, sigma_prior, out_atol, **tile_kw):
    k_x, k_wmu, k_wls, k_bmu, k_bls, k_ew, k_eb = jax.random.split(key, 7)
    X = jax.random.normal(k_x, (batch, n_input), dtype=jnp.float32)
    W_mu = 0.1 * jax.random.normal(k_wmu, (n_input, n_output), dtype=jnp.float32)
    W_logsigma = 0.1 * jax.random.normal(k_wls, (n_input, n_output), dtype=jnp.float32)
    b_mu = 0.1 * jax.random.normal(k_bmu, (n_output,), dtype=jnp.float32)
    b_logsigma = 0.1 * jax.random.normal(k_bls, (n_output,), dtype=jnp.float32)
    # get_random(): eps ~ N(0, sigma_prior), sampled in glue JAX so the kernel is testable.
    eps_W = sigma_prior * jax.random.normal(k_ew, (n_input, n_output), dtype=jnp.float32)
    eps_b = sigma_prior * jax.random.normal(k_eb, (n_output,), dtype=jnp.float32)

    out, lpw, lqw = bbn_layer_forward(
        X, W_mu, W_logsigma, b_mu, b_logsigma, eps_W, eps_b, sigma_prior, **tile_kw)
    out = jax.block_until_ready(out)
    lpw = jax.block_until_ready(lpw)
    lqw = jax.block_until_ready(lqw)
    out_inf = jax.block_until_ready(bbn_layer_infer(X, W_mu, b_mu, **tile_kw))

    ref_out, ref_lpw, ref_lqw = _reference_forward(
        X, W_mu, W_logsigma, b_mu, b_logsigma, eps_W, eps_b, sigma_prior)
    np.testing.assert_allclose(np.asarray(out), np.asarray(ref_out),
                               rtol=1e-4, atol=out_atol)
    np.testing.assert_allclose(float(lpw), float(ref_lpw), rtol=1e-4)
    np.testing.assert_allclose(float(lqw), float(ref_lqw), rtol=1e-4)
    ref_inf = jnp.dot(X, W_mu, precision="highest") + b_mu[None, :]
    np.testing.assert_allclose(np.asarray(out_inf), np.asarray(ref_inf),
                               rtol=1e-4, atol=out_atol)


if __name__ == "__main__":
    # Small shapes consistent with the dense Bayesian layer (single-tile grid path).
    _run_case(jax.random.PRNGKey(0), batch=8, n_input=16, n_output=32,
              sigma_prior=0.1, out_atol=1e-5)
    # Multi-tile path: grid = (3, 2, 3) with small tile caps so the (m, n, k) pipeline,
    # the k-axis accumulator and the i == 0 KL guard are all exercised.
    _run_case(jax.random.PRNGKey(1), batch=24, n_input=384, n_output=256,
              sigma_prior=0.2, out_atol=5e-4, tm_max=8, tn_max=128, tk_max=128)
    print("KERNEL_OK")
</pallas_src>

<mosaic_0001>
module attributes {stable_mosaic.version = 11 : i64} {
  func.func @_bbn_train_kernel(%arg0: i32, %arg1: i32, %arg2: i32, %arg3: memref<8x16xf32, #tpu.memory_space<vmem>>, %arg4: memref<16x128xf32, #tpu.memory_space<vmem>>, %arg5: memref<16x128xf32, #tpu.memory_space<vmem>>, %arg6: memref<16x128xf32, #tpu.memory_space<vmem>>, %arg7: memref<1x128xf32, #tpu.memory_space<vmem>>, %arg8: memref<1x128xf32, #tpu.memory_space<vmem>>, %arg9: memref<1x128xf32, #tpu.memory_space<vmem>>, %arg10: memref<8x128xf32, #tpu.memory_space<vmem>>, %arg11: memref<1x1x1x1xf32, #tpu.memory_space<vmem>>, %arg12: memref<1x1x1x1xf32, #tpu.memory_space<vmem>>, %arg13: memref<8x128xf32, #tpu.memory_space<vmem>>) attributes {dimension_semantics = [#tpu.dimension_semantics<parallel>, #tpu.dimension_semantics<parallel>, #tpu.dimension_semantics<arbitrary>], iteration_bounds = array<i64: 1, 1, 1>, scalar_prefetch = 0 : i64, scratch_operands = 1 : i64, tpu.core_type = #tpu.core_type<tc>, window_params = [{transform_indices = @transform_0, window_bounds = array<i64: 8, 16>}, {transform_indices = @transform_1, window_bounds = array<i64: 16, 128>}, {transform_indices = @transform_2, window_bounds = array<i64: 16, 128>}, {transform_indices = @transform_3, window_bounds = array<i64: 16, 128>}, {transform_indices = @transform_4, window_bounds = array<i64: 1, 128>}, {transform_indices = @transform_5, window_bounds = array<i64: 1, 128>}, {transform_indices = @transform_6, window_bounds = array<i64: 1, 128>}, {transform_indices = @transform_7, window_bounds = array<i64: 8, 128>}, {transform_indices = @transform_8, window_bounds = array<i64: 1, 1, 1, 1>}, {transform_indices = @transform_9, window_bounds = array<i64: 1, 1, 1, 1>}]} {
    %c0 = arith.constant 0 : index
    %c0_0 = arith.constant 0 : index
    %0 = vector.load %arg5[%c0, %c0_0] : memref<16x128xf32, #tpu.memory_space<vmem>>, vector<16x128xf32>
    %cst = arith.constant 0.000000e+00 : f32
    %1 = vector.broadcast %cst : f32 to vector<16x128xf32>
    %2 = arith.maximumf %0, %1 : vector<16x128xf32>
    %3 = math.absf %0 : vector<16x128xf32>
    %cst_1 = arith.constant 0.000000e+00 : f32
    %4 = vector.broadcast %cst_1 : f32 to vector<16x128xf32>
    %5 = arith.subf %4, %3 : vector<16x128xf32>
    %6 = math.exp %5 : vector<16x128xf32>
    %7 = math.log1p %6 : vector<16x128xf32>
    %8 = arith.addf %2, %7 : vector<16x128xf32>
    %c0_2 = arith.constant 0 : index
    %c0_3 = arith.constant 0 : index
    %9 = vector.load %arg6[%c0_2, %c0_3] : memref<16x128xf32, #tpu.memory_space<vmem>>, vector<16x128xf32>
    %10 = arith.mulf %8, %9 : vector<16x128xf32>
    %c0_4 = arith.constant 0 : index
    %c0_5 = arith.constant 0 : index
    %11 = vector.load %arg4[%c0_4, %c0_5] : memref<16x128xf32, #tpu.memory_space<vmem>>, vector<16x128xf32>
    %12 = arith.addf %11, %10 : vector<16x128xf32>
    %c0_i32 = arith.constant 0 : i32
    %13 = arith.cmpi eq, %arg2, %c0_i32 : i32
    %14 = arith.extui %13 : i1 to i32
    %c0_i32_6 = arith.constant 0 : i32
    %15 = arith.cmpi ne, %14, %c0_i32_6 : i32
    scf.if %15 {
      %cst_21 = arith.constant 0.000000e+00 : f32
      %32 = vector.broadcast %cst_21 : f32 to vector<8x128xf32>
      %c0_22 = arith.constant 0 : index
      %c0_23 = arith.constant 0 : index
      %33 = vector.load %arg13[%c0_22, %c0_23] : memref<8x128xf32, #tpu.memory_space<vmem>>, vector<8x128xf32>
      tpu.vector_store %arg13[%c0_22, %c0_23], %32 {strides = array<i32>} : memref<8x128xf32, #tpu.memory_space<vmem>>, vector<8x128xf32>,
      %cst_24 = arith.constant 0.000000e+00 : f32
      %34 = vector.broadcast %cst_24 : f32 to vector<1x1xf32>
      %c0_25 = arith.constant 0 : index
      %c0_26 = arith.constant 0 : index
      %c0_27 = arith.constant 0 : index
      %c0_28 = arith.constant 0 : index
      %35 = vector.load %arg11[%c0_25, %c0_26, %c0_27, %c0_28] : memref<1x1x1x1xf32, #tpu.memory_space<vmem>>, vector<1x1x1x1xf32>
      %36 = vector.shape_cast %35 : vector<1x1x1x1xf32> to vector<1x1xf32>
      %37 = vector.shape_cast %34 : vector<1x1xf32> to vector<1x1x1x1xf32>
      tpu.vector_store %arg11[%c0_25, %c0_26, %c0_27, %c0_28], %37 {strides = array<i32>} : memref<1x1x1x1xf32, #tpu.memory_space<vmem>>, vector<1x1x1x1xf32>,
      %cst_29 = arith.constant 0.000000e+00 : f32
      %38 = vector.broadcast %cst_29 : f32 to vector<1x1xf32>
      %c0_30 = arith.constant 0 : index
      %c0_31 = arith.constant 0 : index
      %c0_32 = arith.constant 0 : index
      %c0_33 = arith.constant 0 : index
      %39 = vector.load %arg12[%c0_30, %c0_31, %c0_32, %c0_33] : memref<1x1x1x1xf32, #tpu.memory_space<vmem>>, vector<1x1x1x1xf32>
      %40 = vector.shape_cast %39 : vector<1x1x1x1xf32> to vector<1x1xf32>
      %41 = vector.shape_cast %38 : vector<1x1xf32> to vector<1x1x1x1xf32>
      tpu.vector_store %arg12[%c0_30, %c0_31, %c0_32, %c0_33], %41 {strides = array<i32>} : memref<1x1x1x1xf32, #tpu.memory_space<vmem>>, vector<1x1x1x1xf32>,
    } else {
    }
    %c0_7 = arith.constant 0 : index
    %c0_8 = arith.constant 0 : index
    %16 = vector.load %arg13[%c0_7, %c0_8] : memref<8x128xf32, #tpu.memory_space<vmem>>, vector<8x128xf32>
    %c0_9 = arith.constant 0 : index
    %c0_10 = arith.constant 0 : index
    %17 = vector.load %arg3[%c0_9, %c0_10] : memref<8x16xf32, #tpu.memory_space<vmem>>, vector<8x16xf32>
    %cst_11 = arith.constant dense<0.000000e+00> : vector<8x128xf32>
    %18 = tpu.matmul %17, %12, %cst_11 {dimension_numbers = #tpu.dot_dimension_numbers<[1], [0], [0], [1], [0, 0, 1, 1], [], []>} : vector<8x16xf32>, vector<16x128xf32>, vector<8x128xf32> -> vector<8x128xf32>
    %19 = arith.addf %16, %18 : vector<8x128xf32>
    %c0_12 = arith.constant 0 : index
    %c0_13 = arith.constant 0 : index
    %20 = vector.load %arg13[%c0_12, %c0_13] : memref<8x128xf32, #tpu.memory_space<vmem>>, vector<8x128xf32>
    tpu.vector_store %arg13[%c0_12, %c0_13], %19 {strides = array<i32>} : memref<8x128xf32, #tpu.memory_space<vmem>>, vector<8x128xf32>,
    %c0_i32_14 = arith.constant 0 : i32
    %21 = arith.cmpi eq, %arg0, %c0_i32_14 : i32
    %22 = arith.extui %21 : i1 to i32
    %c0_i32_15 = arith.constant 0 : i32
    %23 = arith.cmpi ne, %22, %c0_i32_15 : i32
    scf.if %23 {
      %c0_21 = arith.constant 0 : index
      %c0_22 = arith.constant 0 : index
      %c0_23 = arith.constant 0 : index
      %c0_24 = arith.constant 0 : index
      %32 = vector.load %arg11[%c0_21, %c0_22, %c0_23, %c0_24] : memref<1x1x1x1xf32, #tpu.memory_space<vmem>>, vector<1x1x1x1xf32>
      %33 = vector.shape_cast %32 : vector<1x1x1x1xf32> to vector<1x1xf32>
      %34 = arith.mulf %12, %12 : vector<16x128xf32>
      %35 = vector.shape_cast %34 : vector<16x128xf32> to vector<1x16x128xf32>
      %cst_25 = arith.constant dense<0.000000e+00> : vector<1xf32>
      %36 = vector.multi_reduction <add>, %35, %cst_25 [1, 2] : vector<1x16x128xf32> to vector<1xf32>
      %37 = vector.shape_cast %36 : vector<1xf32> to vector<1x1x1xf32>
      %38 = vector.extract %37[0, 0, 0] : f32 from vector<1x1x1xf32>
      %39 = vector.broadcast %38 : f32 to vector<1x1xf32>
      %cst_26 = arith.constant -5.000000e+01 : f32
      %40 = vector.broadcast %cst_26 : f32 to vector<1x1xf32>
      %41 = arith.mulf %39, %40 : vector<1x1xf32>
      %42 = arith.addf %33, %41 : vector<1x1xf32>
      %c0_27 = arith.constant 0 : index
      %c0_28 = arith.constant 0 : index
      %c0_29 = arith.constant 0 : index
      %c0_30 = arith.constant 0 : index
      %43 = vector.load %arg11[%c0_27, %c0_28, %c0_29, %c0_30] : memref<1x1x1x1xf32, #tpu.memory_space<vmem>>, vector<1x1x1x1xf32>
      %44 = vector.shape_cast %43 : vector<1x1x1x1xf32> to vector<1x1xf32>
      %45 = vector.shape_cast %42 : vector<1x1xf32> to vector<1x1x1x1xf32>
      tpu.vector_store %arg11[%c0_27, %c0_28, %c0_29, %c0_30], %45 {strides = array<i32>} : memref<1x1x1x1xf32, #tpu.memory_space<vmem>>, vector<1x1x1x1xf32>,
      %c0_31 = arith.constant 0 : index
      %c0_32 = arith.constant 0 : index
      %c0_33 = arith.constant 0 : index
      %c0_34 = arith.constant 0 : index
      %46 = vector.load %arg12[%c0_31, %c0_32, %c0_33, %c0_34] : memref<1x1x1x1xf32, #tpu.memory_space<vmem>>, vector<1x1x1x1xf32>
      %47 = vector.shape_cast %46 : vector<1x1x1x1xf32> to vector<1x1xf32>
      %cst_35 = arith.constant 0.000000e+00 : f32
      %48 = vector.broadcast %cst_35 : f32 to vector<16x128xf32>
      %49 = arith.subf %48, %0 : vector<16x128xf32>
      %50 = arith.mulf %10, %10 : vector<16x128xf32>
      %cst_36 = arith.constant 5.000000e-01 : f32
      %51 = vector.broadcast %cst_36 : f32 to vector<16x128xf32>
      %52 = arith.mulf %51, %50 : vector<16x128xf32>
      %cst_37 = arith.constant -2.000000e+00 : f32
      %53 = vector.broadcast %cst_37 : f32 to vector<16x128xf32>
      %54 = arith.mulf %53, %0 : vector<16x128xf32>
      %55 = math.exp %54 : vector<16x128xf32>
      %56 = arith.mulf %52, %55 : vector<16x128xf32>
      %57 = arith.subf %49, %56 : vector<16x128xf32>
      %58 = vector.shape_cast %57 : vector<16x128xf32> to vector<1x16x128xf32>
      %cst_38 = arith.constant dense<0.000000e+00> : vector<1xf32>
      %59 = vector.multi_reduction <add>, %58, %cst_38 [1, 2] : vector<1x16x128xf32> to vector<1xf32>
      %60 = vector.shape_cast %59 : vector<1xf32> to vector<1x1x1xf32>
      %61 = vector.extract %60[0, 0, 0] : f32 from vector<1x1x1xf32>
      %62 = vector.broadcast %61 : f32 to vector<1x1xf32>
      %63 = arith.addf %47, %62 : vector<1x1xf32>
      %c0_39 = arith.constant 0 : index
      %c0_40 = arith.constant 0 : index
      %c0_41 = arith.constant 0 : index
      %c0_42 = arith.constant 0 : index
      %64 = vector.load %arg12[%c0_39, %c0_40, %c0_41, %c0_42] : memref<1x1x1x1xf32, #tpu.memory_space<vmem>>, vector<1x1x1x1xf32>
      %65 = vector.shape_cast %64 : vector<1x1x1x1xf32> to vector<1x1xf32>
      %66 = vector.shape_cast %63 : vector<1x1xf32> to vector<1x1x1x1xf32>
      tpu.vector_store %arg12[%c0_39, %c0_40, %c0_41, %c0_42], %66 {strides = array<i32>} : memref<1x1x1x1xf32, #tpu.memory_space<vmem>>, vector<1x1x1x1xf32>,
    } else {
    }
    %c0_i32_16 = arith.constant 0 : i32
    %24 = arith.cmpi eq, %arg0, %c0_i32_16 : i32
    %c0_i32_17 = arith.constant 0 : i32
    %25 = arith.cmpi eq, %arg2, %c0_i32_17 : i32
    %26 = arith.andi %24, %25 : i1
    %27 = arith.extui %26 : i1 to i32
    %c0_i32_18 = arith.constant 0 : i32
    %28 = arith.cmpi ne, %27, %c0_i32_18 : i32
    scf.if %28 {
      %c0_21 = arith.constant 0 : index
      %c0_22 = arith.constant 0 : index
      %32 = vector.load %arg8[%c0_21, %c0_22] : memref<1x128xf32, #tpu.memory_space<vmem>>, vector<1x128xf32>
      %cst_23 = arith.constant 0.000000e+00 : f32
      %33 = vector.broadcast %cst_23 : f32 to vector<1x128xf32>
      %34 = arith.maximumf %32, %33 : vector<1x128xf32>
      %35 = math.absf %32 : vector<1x128xf32>
      %cst_24 = arith.constant 0.000000e+00 : f32
      %36 = vector.broadcast %cst_24 : f32 to vector<1x128xf32>
      %37 = arith.subf %36, %35 : vector<1x128xf32>
      %38 = math.exp %37 : vector<1x128xf32>
      %39 = math.log1p %38 : vector<1x128xf32>
      %40 = arith.addf %34, %39 : vector<1x128xf32>
      %c0_25 = arith.constant 0 : index
      %c0_26 = arith.constant 0 : index
      %41 = vector.load %arg9[%c0_25, %c0_26] : memref<1x128xf32, #tpu.memory_space<vmem>>, vector<1x128xf32>
      %42 = arith.mulf %40, %41 : vector<1x128xf32>
      %c0_27 = arith.constant 0 : index
      %c0_28 = arith.constant 0 : index
      %43 = vector.load %arg7[%c0_27, %c0_28] : memref<1x128xf32, #tpu.memory_space<vmem>>, vector<1x128xf32>
      %44 = arith.addf %43, %42 : vector<1x128xf32>
      %c0_29 = arith.constant 0 : index
      %c0_30 = arith.constant 0 : index
      %c0_31 = arith.constant 0 : index
      %c0_32 = arith.constant 0 : index
      %45 = vector.load %arg11[%c0_29, %c0_30, %c0_31, %c0_32] : memref<1x1x1x1xf32, #tpu.memory_space<vmem>>, vector<1x1x1x1xf32>
      %46 = vector.shape_cast %45 : vector<1x1x1x1xf32> to vector<1x1xf32>
      %47 = arith.mulf %44, %44 : vector<1x128xf32>
      %48 = vector.shape_cast %47 : vector<1x128xf32> to vector<1x1x128xf32>
      %cst_33 = arith.constant dense<0.000000e+00> : vector<1xf32>
      %49 = vector.multi_reduction <add>, %48, %cst_33 [1, 2] : vector<1x1x128xf32> to vector<1xf32>
      %50 = vector.shape_cast %49 : vector<1xf32> to vector<1x1x1xf32>
      %51 = vector.extract %50[0, 0, 0] : f32 from vector<1x1x1xf32>
      %52 = vector.broadcast %51 : f32 to vector<1x1xf32>
      %cst_34 = arith.constant -5.000000e+01 : f32
      %53 = vector.broadcast %cst_34 : f32 to vector<1x1xf32>
      %54 = arith.mulf %52, %53 : vector<1x1xf32>
      %55 = arith.addf %46, %54 : vector<1x1xf32>
      %c0_35 = arith.constant 0 : index
      %c0_36 = arith.constant 0 : index
      %c0_37 = arith.constant 0 : index
      %c0_38 = arith.constant 0 : index
      %56 = vector.load %arg11[%c0_35, %c0_36, %c0_37, %c0_38] : memref<1x1x1x1xf32, #tpu.memory_space<vmem>>, vector<1x1x1x1xf32>
      %57 = vector.shape_cast %56 : vector<1x1x1x1xf32> to vector<1x1xf32>
      %58 = vector.shape_cast %55 : vector<1x1xf32> to vector<1x1x1x1xf32>
      tpu.vector_store %arg11[%c0_35, %c0_36, %c0_37, %c0_38], %58 {strides = array<i32>} : memref<1x1x1x1xf32, #tpu.memory_space<vmem>>, vector<1x1x1x1xf32>,
      %c0_39 = arith.constant 0 : index
      %c0_40 = arith.constant 0 : index
      %c0_41 = arith.constant 0 : index
      %c0_42 = arith.constant 0 : index
      %59 = vector.load %arg12[%c0_39, %c0_40, %c0_41, %c0_42] : memref<1x1x1x1xf32, #tpu.memory_space<vmem>>, vector<1x1x1x1xf32>
      %60 = vector.shape_cast %59 : vector<1x1x1x1xf32> to vector<1x1xf32>
      %cst_43 = arith.constant 0.000000e+00 : f32
      %61 = vector.broadcast %cst_43 : f32 to vector<1x128xf32>
      %62 = arith.subf %61, %32 : vector<1x128xf32>
      %63 = arith.mulf %42, %42 : vector<1x128xf32>
      %cst_44 = arith.constant 5.000000e-01 : f32
      %64 = vector.broadcast %cst_44 : f32 to vector<1x128xf32>
      %65 = arith.mulf %64, %63 : vector<1x128xf32>
      %cst_45 = arith.constant -2.000000e+00 : f32
      %66 = vector.broadcast %cst_45 : f32 to vector<1x128xf32>
      %67 = arith.mulf %66, %32 : vector<1x128xf32>
      %68 = math.exp %67 : vector<1x128xf32>
      %69 = arith.mulf %65, %68 : vector<1x128xf32>
      %70 = arith.subf %62, %69 : vector<1x128xf32>
      %71 = vector.shape_cast %70 : vector<1x128xf32> to vector<1x1x128xf32>
      %cst_46 = arith.constant dense<0.000000e+00> : vector<1xf32>
      %72 = vector.multi_reduction <add>, %71, %cst_46 [1, 2] : vector<1x1x128xf32> to vector<1xf32>
      %73 = vector.shape_cast %72 : vector<1xf32> to vector<1x1x1xf32>
      %74 = vector.extract %73[0, 0, 0] : f32 from vector<1x1x1xf32>
      %75 = vector.broadcast %74 : f32 to vector<1x1xf32>
      %76 = arith.addf %60, %75 : vector<1x1xf32>
      %c0_47 = arith.constant 0 : index
      %c0_48 = arith.constant 0 : index
      %c0_49 = arith.constant 0 : index
      %c0_50 = arith.constant 0 : index
      %77 = vector.load %arg12[%c0_47, %c0_48, %c0_49, %c0_50] : memref<1x1x1x1xf32, #tpu.memory_space<vmem>>, vector<1x1x1x1xf32>
      %78 = vector.shape_cast %77 : vector<1x1x1x1xf32> to vector<1x1xf32>
      %79 = vector.shape_cast %76 : vector<1x1xf32> to vector<1x1x1x1xf32>
      tpu.vector_store %arg12[%c0_47, %c0_48, %c0_49, %c0_50], %79 {strides = array<i32>} : memref<1x1x1x1xf32, #tpu.memory_space<vmem>>, vector<1x1x1x1xf32>,
    } else {
    }
    %c0_i32_19 = arith.constant 0 : i32
    %29 = arith.cmpi eq, %arg2, %c0_i32_19 : i32
    %30 = arith.extui %29 : i1 to i32
    %c0_i32_20 = arith.constant 0 : i32
    %31 = arith.cmpi ne, %30, %c0_i32_20 : i32
    scf.if %31 {
      %c0_21 = arith.constant 0 : index
      %c0_22 = arith.constant 0 : index
      %32 = vector.load %arg7[%c0_21, %c0_22] : memref<1x128xf32, #tpu.memory_space<vmem>>, vector<1x128xf32>
      %c0_23 = arith.constant 0 : index
      %c0_24 = arith.constant 0 : index
      %33 = vector.load %arg8[%c0_23, %c0_24] : memref<1x128xf32, #tpu.memory_space<vmem>>, vector<1x128xf32>
      %cst_25 = arith.constant 0.000000e+00 : f32
      %34 = vector.broadcast %cst_25 : f32 to vector<1x128xf32>
      %35 = arith.maximumf %33, %34 : vector<1x128xf32>
      %36 = math.absf %33 : vector<1x128xf32>
      %cst_26 = arith.constant 0.000000e+00 : f32
      %37 = vector.broadcast %cst_26 : f32 to vector<1x128xf32>
      %38 = arith.subf %37, %36 : vector<1x128xf32>
      %39 = math.exp %38 : vector<1x128xf32>
      %40 = math.log1p %39 : vector<1x128xf32>
      %41 = arith.addf %35, %40 : vector<1x128xf32>
      %c0_27 = arith.constant 0 : index
      %c0_28 = arith.constant 0 : index
      %42 = vector.load %arg9[%c0_27, %c0_28] : memref<1x128xf32, #tpu.memory_space<vmem>>, vector<1x128xf32>
      %43 = arith.mulf %41, %42 : vector<1x128xf32>
      %44 = arith.addf %32, %43 : vector<1x128xf32>
      %c0_29 = arith.constant 0 : index
      %c0_30 = arith.constant 0 : index
      %45 = vector.load %arg13[%c0_29, %c0_30] : memref<8x128xf32, #tpu.memory_space<vmem>>, vector<8x128xf32>
      %46 = vector.broadcast %44 : vector<1x128xf32> to vector<8x128xf32>
      %47 = arith.addf %45, %46 : vector<8x128xf32>
      %c0_31 = arith.constant 0 : index
      %c0_32 = arith.constant 0 : index
      %48 = vector.load %arg10[%c0_31, %c0_32] : memref<8x128xf32, #tpu.memory_space<vmem>>, vector<8x128xf32>
      tpu.vector_store %arg10[%c0_31, %c0_32], %47 {strides = array<i32>} : memref<8x128xf32, #tpu.memory_space<vmem>>, vector<8x128xf32>,
    } else {
    }
    return
  }
  func.func @transform_0(%arg0: i32, %arg1: i32, %arg2: i32) -> (i32, i32) {
    %c0_i32 = arith.constant 0 : i32
    return %arg0, %arg2 : i32, i32
  }
  func.func @transform_1(%arg0: i32, %arg1: i32, %arg2: i32) -> (i32, i32) {
    %c0_i32 = arith.constant 0 : i32
    return %arg2, %arg1 : i32, i32
  }
  func.func @transform_2(%arg0: i32, %arg1: i32, %arg2: i32) -> (i32, i32) {
    %c0_i32 = arith.constant 0 : i32
    return %arg2, %arg1 : i32, i32
  }
  func.func @transform_3(%arg0: i32, %arg1: i32, %arg2: i32) -> (i32, i32) {
    %c0_i32 = arith.constant 0 : i32
    return %arg2, %arg1 : i32, i32
  }
  func.func @transform_4(%arg0: i32, %arg1: i32, %arg2: i32) -> (i32, i32) {
    %c0_i32 = arith.constant 0 : i32
    %c0_i32_0 = arith.constant 0 : i32
    return %c0_i32, %arg1 : i32, i32
  }
  func.func @transform_5(%arg0: i32, %arg1: i32, %arg2: i32) -> (i32, i32) {
    %c0_i32 = arith.constant 0 : i32
    %c0_i32_0 = arith.constant 0 : i32
    return %c0_i32, %arg1 : i32, i32
  }
  func.func @transform_6(%arg0: i32, %arg1: i32, %arg2: i32) -> (i32, i32) {
    %c0_i32 = arith.constant 0 : i32
    %c0_i32_0 = arith.constant 0 : i32
    return %c0_i32, %arg1 : i32, i32
  }
  func.func @transform_7(%arg0: i32, %arg1: i32, %arg2: i32) -> (i32, i32) {
    %c0_i32 = arith.constant 0 : i32
    return %arg0, %arg1 : i32, i32
  }
  func.func @transform_8(%arg0: i32, %arg1: i32, %arg2: i32) -> (i32, i32, i32, i32) {
    %c0_i32 = arith.constant 0 : i32
    %c0_i32_0 = arith.constant 0 : i32
    %c0_i32_1 = arith.constant 0 : i32
    return %arg0, %arg1, %c0_i32, %c0_i32_0 : i32, i32, i32, i32
  }
  func.func @transform_9(%arg0: i32, %arg1: i32, %arg2: i32) -> (i32, i32, i32, i32) {
    %c0_i32 = arith.constant 0 : i32
    %c0_i32_0 = arith.constant 0 : i32
    %c0_i32_1 = arith.constant 0 : i32
    return %arg0, %arg1, %c0_i32, %c0_i32_0 : i32, i32, i32, i32
  }
}

</mosaic_0001>

<bundles_post_ra>
// kernel: tpu_custom_call.1
= control target key start
LH: loop header
LB: loop body
LE: loop exit
PB: predicated region body
PF: predicated region fallthrough
CT: control target
= control target key end

     0   :  { %15 = vsyncpa [#allocation4], 0  ;;  %s744_s0 = inlined_call_operand.hbm [shape: f32[8,16], index: 0, kind: input, shape index: {}]   ;;  %s745_s1 = inlined_call_operand.hbm [shape: f32[16,128], index: 1, kind: input, shape index: {}]   ;;  %s746_s2 = inlined_call_operand.hbm [shape: f32[16,128], index: 2, kind: input, shape index: {}]   ;;  %s747_s3 = inlined_call_operand.hbm [shape: f32[16,128], index: 3, kind: input, shape index: {}]   ;;  %s748_s4 = inlined_call_operand.vmem [shape: f32[1,128], index: 4, kind: input, shape index: {}]   ;;  %s749_s5 = inlined_call_operand.vmem [shape: f32[1,128], index: 5, kind: input, shape index: {}]   ;;  %s750_s6 = inlined_call_operand.vmem [shape: f32[1,128], index: 6, kind: input, shape index: {}]   ;;  %s751_s7 = inlined_call_operand.hbm [shape: f32[8,128], index: 7, kind: output, shape index: {0}]   ;;  %s752_s8 = inlined_call_operand.hbm [shape: f32[1,1,1,1], index: 8, kind: output, shape index: {1}]   ;;  %s753_s9 = inlined_call_operand.hbm [shape: f32[1,1,1,1], index: 9, kind: output, shape index: {2}]  }
   0x1   :  { %16 = vsyncpa [#allocation7], 0 }
   0x2   :  { %17 = vsyncpa [#allocation10], 0 }
   0x3   :  { %18 = vsyncpa [#allocation5], 0 }
   0x4   :  { %19 = vsyncpa [#allocation13], 0  ;;  %s604_s30 = smov [#allocation6]  }
   0x5   :  { %s35_s10 = sshll.u32 %s604_s30, 4  ;;  %s36_s10 = int_to_ptr.vmem [resolvable:$true] %s35_s10 }
   0x6   :  { %s462_s11 = scalar_lea.vmem %s36_s10, 256  ;;  %p467_p1 = scmp.lt.s32.totalorder %s36_s10, %s36_s10 }
   0x7   :  { %p463_p0 = scmp.ne.s32.totalorder %s36_s10, %s462_s11  ;;  %p468_p2 = scmp.lt.s32.totalorder %s462_s11, %s462_s11 }
   0x9   :  { %p469_p3 = por %p468_p2, %p467_p1 }
   0xb   :  { %p470_p4 = pnand %p469_p3, %p463_p0 }
   0xd   :  { %473 = shalt.err (!%p470_p4)
}
   0xe   :  { %s605_s12 = smov 128   ;;  %s606_s13 = smov 8  }
   0xf   :  { %41 = dma.hbm_to_vmem [thread:$0]  %s745_s1, 256, %s36_s10, [#allocation7], %s605_s12, %s605_s12, %s606_s13  }
  0x10   :  { %s607_s16 = smov [#allocation3]   ;;  %s608_s18 = smov [#allocation8]  }
  0x11   :  { %s26_s17 = sshll.u32 %s607_s16, 4  ;;  %s47_s19 = sshll.u32 %s608_s18, 4  ;;  %s27_s17 = int_to_ptr.vmem [resolvable:$true] %s26_s17  ;;  %s48_s19 = int_to_ptr.vmem [resolvable:$true] %s47_s19 }
  0x12   :  { %s482_s20 = scalar_lea.vmem %s27_s17, 128  ;;  %p487_p6 = scmp.lt.s32.totalorder %s27_s17, %s27_s17 }
  0x13   :  { %p483_p5 = scmp.ne.s32.totalorder %s27_s17, %s482_s20  ;;  %p488_p7 = scmp.lt.s32.totalorder %s482_s20, %s482_s20 }
  0x15   :  { %p489_p8 = por %p488_p7, %p487_p6 }
  0x17   :  { %p490_p9 = pnand %p489_p8, %p483_p5 }
  0x19   :  { %493 = shalt.err (!%p490_p9)
}
  0x1a   :  { %29 = dma.hbm_to_vmem [thread:$0]  %s744_s0, 128, %s27_s17, [#allocation4]  }
  0x1b   :  { %s502_s23 = scalar_lea.vmem %s48_s19, 256  ;;  %p507_p11 = scmp.lt.s32.totalorder %s48_s19, %s48_s19 }
  0x1c   :  { %p503_p10 = scmp.ne.s32.totalorder %s48_s19, %s502_s23  ;;  %p508_p12 = scmp.lt.s32.totalorder %s502_s23, %s502_s23 }
  0x1e   :  { %p509_p13 = por %p508_p12, %p507_p11 }
  0x20   :  { %p510_p0 = pnand %p509_p13, %p503_p10 }
  0x22   :  { %513 = shalt.err (!%p510_p0)
}
  0x23   :  { %53 = dma.hbm_to_vmem [thread:$0]  %s746_s2, 256, %s48_s19, [#allocation7], %s605_s12, %s605_s12, %s606_s13  }
  0x24   :  { %s609_s25 = smov [#allocation9]  }
  0x25   :  { %s59_s26 = sshll.u32 %s609_s25, 4  ;;  %s60_s26 = int_to_ptr.vmem [resolvable:$true] %s59_s26 }
  0x26   :  { %s522_s27 = scalar_lea.vmem %s60_s26, 256  ;;  %p527_p2 = scmp.lt.s32.totalorder %s60_s26, %s60_s26 }
  0x27   :  { %p523_p1 = scmp.ne.s32.totalorder %s60_s26, %s522_s27  ;;  %p528_p3 = scmp.lt.s32.totalorder %s522_s27, %s522_s27 }
  0x29   :  { %p529_p4 = por %p528_p3, %p527_p2 }
  0x2b   :  { %p530_p5 = pnand %p529_p4, %p523_p1 }
  0x2d   :  { %533 = shalt.err (!%p530_p5)
}
  0x2e   :  { %65 = dma.hbm_to_vmem [thread:$0]  %s747_s3, 256, %s60_s26, [#allocation10], %s605_s12, %s605_s12, %s606_s13  }
  0x2f   :  { %594 = dma.done.wait [#allocation4], 128  }
  0x30   :  { %595 = vsyncadd [#allocation4], 4294967168 }
  0x31   :  { %596 = dma.done.wait [#allocation7], 512  }
  0x32   :  { %597 = vsyncadd [#allocation7], 4294966784 }
  0x33   :  { %598 = dma.done.wait [#allocation10], 256  }
  0x34   :  { %599 = vsyncadd [#allocation10], 4294967040  ;;  %v610_v0 = vmov 0.0   ;;  %vm611_vm0 = vmmov 0   ;;  %v688_v1 = vld [vmem:[#allocation8] sm:$0xff]  ;;  %v690_v2 = vld [vmem:[#allocation8 + $0x8] sm:$0xff] }
  0x35   :  { %406 = vmatprep.subr.mxu0 %v610_v0  ;;  %410 = vmatprep.mubr.msk.f32.mxu0 %vm611_vm0, %v610_v0  ;;  %v88_v3 = vand.u32 2147483647, %v688_v1  ;;  %v89_v4 = vand.u32 2147483647, %v690_v2  ;;  %v697_v7 = vld [vmem:[%s749_s5] sm:$0x1] }
  0x36   :  { %v268_v10 = vand.u32 2147483647, %v697_v7  ;;  %v239_v18 = vmul.f32 -2.0, %v688_v1  ;;  %v240_v19 = vmul.f32 -2.0, %v690_v2  ;;  %v308_v24 = vmul.f32 -2.0, %v697_v7  ;;  %v116_v43 = vld [vmem:[#allocation9] sm:$0xff] }
  0x37   :  { %v90_v5 = vsub.f32 0.0, %v88_v3  ;;  %v91_v6 = vsub.f32 0.0, %v89_v4  ;;  %v86_v32 = vmax.f32 %v688_v1, 0.0  ;;  %v87_v39 = vmax.f32 %v690_v2, 0.0  ;;  %v117_v48 = vld [vmem:[#allocation9 + $0x8] sm:$0xff]  ;;  %v120_v51 = vld [vmem:[#allocation6] sm:$0xff] }
  0x38   :  { %v269_v11 = vsub.f32 0.0, %v268_v10  ;;  %v241_v23 = vmul.f32 1.442695, %v239_v18  ;;  %v243_v25 = vmul.f32 1.442695, %v240_v19  ;;  %v267_v49 = vmax.f32 %v697_v7, 0.0 }
  0x39   :  { %v92_v8 = vmul.f32 1.442695, %v90_v5  ;;  %v94_v9 = vmul.f32 1.442695, %v91_v6  ;;  %v309_v30 = vmul.f32 1.442695, %v308_v24 }
  0x3a   :  { %v270_v12 = vmul.f32 1.442695, %v269_v11  ;;  %v121_v54 = vld [vmem:[#allocation6 + $0x8] sm:$0xff]  ;;  %v282_v57 = vld [vmem:[%s750_s6] sm:$0x1]  ;;  %v234_v11 = vsub.f32 0.0, %v690_v2 }
  0x3b   :  { %432 = vpow2.f32 %v92_v8  ;;  %v284_v63 = vld [vmem:[%s748_s4] sm:$0x1]  ;;  %v233_v8 = vsub.f32 0.0, %v688_v1  ;;  %vm134_vm4 = vcmask 130048   ;;  %vm288_vm5 = vcmask 1040384   ;;  %s612_s17 = smov [#allocation11]  }
  0x3c   :  { %434 = vpow2.f32 %v94_v9  ;;  %vm129_vm6 = vcmask 0   ;;  %s364_s18 = sshll.u32 %s612_s17, 4  ;;  %s365_s18 = int_to_ptr.vmem [resolvable:$true] %s364_s18 }
  0x3d   :  { %436 = vpow2.f32 %v270_v12  ;;  %130 = vst.msk [vmem:[#allocation12] sm:$0x1] %vm129_vm6, %v610_v0  ;;  %131 = vst.msk [vmem:[#allocation14] sm:$0x1] %vm129_vm6, %v610_v0  ;;  %s534_s19 = scalar_lea.vmem %s365_s18, 128  ;;  %p539_p7 = scmp.lt.s32.totalorder %s365_s18, %s365_s18 }
  0x3e   :  { %p535_p6 = scmp.ne.s32.totalorder %s365_s18, %s534_s19  ;;  %p540_p8 = scmp.lt.s32.totalorder %s534_s19, %s534_s19 }
  0x40   :  { %p541_p9 = por %p540_p8, %p539_p7 }
  0x42   :  { %p542_p10 = pnand %p541_p9, %p535_p6 }
  0x48   :  { %v433_v13 = vpop.eup %432 }
  0x49   :  { %v435_v14 = vpop.eup %434  ;;  %v96_v15 = vadd.f32 1.0, %v433_v13  ;;  %v99_v21 = vmul.f32 -0.5, %v433_v13  ;;  %v102_v28 = vand.u32 2147483647, %v433_v13 }
  0x4a   :  { %v105_v16 = vadd.f32 1.0, %v435_v14  ;;  %v437_v17 = vpop.eup %436  ;;  %v108_v22 = vmul.f32 -0.5, %v435_v14  ;;  %v111_v31 = vand.u32 2147483647, %v435_v14 }
  0x4b   :  { %438 = vlog2.f32 %v96_v15  ;;  %v272_v20 = vadd.f32 1.0, %v437_v17  ;;  %v100_v26 = vadd.f32 1.0, %v99_v21  ;;  %v275_v27 = vmul.f32 -0.5, %v437_v17 }
  0x4c   :  { %440 = vlog2.f32 %v105_v16  ;;  %v109_v29 = vadd.f32 1.0, %v108_v22  ;;  %vm103_vm1 = vcmp.lt.f32.partialorder %v102_v28, 0.0004427343  ;;  %v278_v37 = vand.u32 2147483647, %v437_v17 }
  0x4d   :  { %442 = vlog2.f32 %v272_v20  ;;  %v101_v33 = vmul.f32 %v433_v13, %v100_v26  ;;  %v276_v34 = vadd.f32 1.0, %v275_v27  ;;  %vm112_vm2 = vcmp.lt.f32.partialorder %v111_v31, 0.0004427343  ;;  %v133_v13 = vld [vmem:[#allocation3] sm:$0xff] }
  0x4e   :  { %444 = vpow2.f32 %v241_v23  ;;  %v110_v36 = vmul.f32 %v435_v14, %v109_v29  ;;  %vm279_vm3 = vcmp.lt.f32.partialorder %v278_v37, 0.0004427343  ;;  %v305_v21 = vsub.f32 0.0, %v697_v7  ;;  %v330_v7 = vld [vmem:[%s749_s5] sm:$0x1] }
  0x4f   :  { %446 = vpow2.f32 %v243_v25  ;;  %v277_v44 = vmul.f32 %v437_v17, %v276_v34  ;;  %v332_v28 = vand.u32 2147483647, %v330_v7 }
  0x50   :  { %448 = vpow2.f32 %v309_v30 }
  0x51   :  { %v333_v29 = vsub.f32 0.0, %v332_v28 }
  0x53   :  { %v334_v30 = vmul.f32 1.442695, %v333_v29 }
  0x55   :  { %450 = vpow2.f32 %v334_v30 }
  0x58   :  { %v439_v35 = vpop.eup %438 }
  0x59   :  { %v441_v38 = vpop.eup %440  ;;  %v98_v40 = vmul.f32 0.6931472, %v439_v35 }
  0x5a   :  { %v107_v41 = vmul.f32 0.6931472, %v441_v38  ;;  %v443_v45 = vpop.eup %442 }
  0x5b   :  { %v104_v42 = vsel %vm103_vm1, %v101_v33, %v98_v40  ;;  %v274_v52 = vmul.f32 0.6931472, %v443_v45  ;;  %v445_v61 = vpop.eup %444 }
  0x5c   :  { %v113_v46 = vsel %vm112_vm2, %v110_v36, %v107_v41  ;;  %v114_v47 = vadd.f32 %v104_v42, %v86_v32  ;;  %v447_v4 = vpop.eup %446 }
  0x5d   :  { %v115_v50 = vadd.f32 %v113_v46, %v87_v39  ;;  %v280_v56 = vsel %vm279_vm3, %v277_v44, %v274_v52  ;;  %v449_v17 = vpop.eup %448 }
  0x5e   :  { %v118_v53 = vmul.f32 %v116_v43, %v114_v47  ;;  %v281_v59 = vadd.f32 %v280_v56, %v267_v49 }
  0x5f   :  { %v119_v55 = vmul.f32 %v117_v48, %v115_v50 }
  0x60   :  { %v122_v58 = vadd.f32 %v120_v51, %v118_v53  ;;  %v235_v60 = vmul.f32 %v118_v53, %v118_v53  ;;  %v283_v6 = vmul.f32 %v282_v57, %v281_v59 }
  0x61   :  { %v123_v62 = vadd.f32 %v121_v54, %v119_v55  ;;  %v236_v3 = vmul.f32 %v119_v55, %v119_v55 }
  0x62   :  { %v215_v5 = vmul.f32 %v122_v58, %v122_v58  ;;  %v237_v9 = vmul.f32 0.5, %v235_v60  ;;  %v285_v14 = vadd.f32 %v284_v63, %v283_v6  ;;  %v306_v15 = vmul.f32 %v283_v6, %v283_v6  ;;  %v451_v44 = vpop.eup %450 }
  0x63   :  { %v216_v10 = vmul.f32 %v123_v62, %v123_v62  ;;  %v238_v12 = vmul.f32 0.5, %v236_v3  ;;  %407 = vmatpush3.msra.mxu0 %v123_v62  ;;  %v336_v53 = vadd.f32 1.0, %v451_v44  ;;  %v339_v60 = vmul.f32 -0.5, %v451_v44 }
  0x64   :  { %v245_v16 = vmul.f32 %v445_v61, %v237_v9  ;;  %408 = vmatprep.subr.mxu0 %v610_v0  ;;  %v287_v20 = vmul.f32 %v285_v14, %v285_v14  ;;  %v307_v22 = vmul.f32 0.5, %v306_v15  ;;  %v342_v63 = vand.u32 2147483647, %v451_v44 }
  0x65   :  { %v217_v18 = vadd.f32 %v216_v10, %v215_v5  ;;  %v246_v19 = vmul.f32 %v447_v4, %v238_v12  ;;  %409 = vmatpush3.msra.mxu0 %v122_v58  ;;  %452 = vlog2.f32 %v336_v53  ;;  %v340_v61 = vadd.f32 1.0, %v339_v60  ;;  %v346_v10 = vld [vmem:[%s750_s6] sm:$0x1] }
  0x66   :  { %v247_v1 = vsub.f32 %v233_v8, %v245_v16  ;;  %411 = vmatmul.mubr.msk.f32.vlgmr.msra.gmra.mxu0 %vm134_vm4, %v133_v13  ;;  %v289_v23 = vsel %vm288_vm5, %v287_v20, 0.0  ;;  %v311_v24 = vmul.f32 %v449_v17, %v307_v22  ;;  %vm343_vm7 = vcmp.lt.f32.partialorder %v342_v63, 0.0004427343  ;;  %v329_v13 = vld [vmem:[%s748_s4] sm:$0x1] }
  0x67   :  { %218 = vadd.xlane.f32.xlu0 %v217_v18  ;;  %v248_v2 = vsub.f32 %v234_v11, %v246_v19  ;;  %290 = vadd.xlane.f32.xlu1 %v289_v23  ;;  %v341_v4 = vmul.f32 %v451_v44, %v340_v61  ;;  %v331_v5 = vmax.f32 %v330_v7, 0.0  ;;  %v351_v9 = vlaneseq }
  0x68   :  { %v312_v26 = vsub.f32 %v305_v21, %v311_v24 }
  0x69   :  { %v249_v25 = vadd.f32 %v248_v2, %v247_v1  ;;  %v352_v12 = vshrl.u32 %v351_v9, 7 }
  0x6a   :  { %v313_v27 = vsel %vm288_vm5, %v312_v26, 0.0 }
  0x6b   :  { %250 = vadd.xlane.f32.xlu0 %v249_v25  ;;  %314 = vadd.xlane.f32.xlu1 %v313_v27  ;;  %v353_v15 = vsub.s32 0, %v352_v12 }
  0x72   :  { %v453_v62 = vpop.eup %452 }
  0x73   :  { %v338_v3 = vmul.f32 0.6931472, %v453_v62 }
  0x75   :  { %v344_v6 = vsel %vm343_vm7, %v341_v4, %v338_v3 }
  0x76   :  { %v345_v8 = vadd.f32 %v344_v6, %v331_v5 }
  0x78   :  { %v347_v11 = vmul.f32 %v346_v10, %v345_v8 }
  0x7a   :  { %v348_v14 = vadd.f32 %v347_v11, %v329_v13 }
  0x7c   :  { %v354_v16 = vrot.slane %v348_v14, %v353_v15 }
  0xf0   :  { %v219_v31 = vpop.xlane.xlu0 %218  ;;  %v291_v33 = vpop.xlane.xlu1 %290 }
  0xf1   :  { %v220_v32 = vrot.slane %v219_v31, 4  ;;  %v292_v35 = vrot.slane %v291_v33, 4 }
  0xf3   :  { %v221_v34 = vadd.f32 %v220_v32, %v219_v31  ;;  %v293_v38 = vadd.f32 %v292_v35, %v291_v33 }
  0xf4   :  { %v251_v36 = vpop.xlane.xlu0 %250  ;;  %v315_v40 = vpop.xlane.xlu1 %314 }
  0xf5   :  { %v222_v37 = vrot.slane %v221_v34, 2  ;;  %v252_v39 = vrot.slane %v251_v36, 4  ;;  %v294_v41 = vrot.slane %v293_v38, 2  ;;  %v316_v42 = vrot.slane %v315_v40, 4 }
  0xf7   :  { %v253_v0 = vadd.f32 %v252_v39, %v251_v36  ;;  %v223_v43 = vadd.f32 %v222_v37, %v221_v34  ;;  %v317_v46 = vadd.f32 %v316_v42, %v315_v40  ;;  %v295_v48 = vadd.f32 %v294_v41, %v293_v38 }
  0xf9   :  { %v254_v45 = vrot.slane %v253_v0, 2  ;;  %v224_v47 = vrot.slane %v223_v43, 1  ;;  %v318_v50 = vrot.slane %v317_v46, 2  ;;  %v296_v52 = vrot.slane %v295_v48, 1 }
  0xfb   :  { %v255_v49 = vadd.f32 %v254_v45, %v253_v0  ;;  %v225_v51 = vadd.f32 %v224_v47, %v223_v43  ;;  %v319_v54 = vadd.f32 %v318_v50, %v317_v46  ;;  %v297_v56 = vadd.f32 %v296_v52, %v295_v48 }
  0xfd   :  { %413 = vpush %v225_v51  ;;  %v256_v55 = vrot.slane %v255_v49, 1  ;;  %v320_v58 = vrot.slane %v319_v54, 1 }
  0xff   :  { %v257_v57 = vadd.f32 %v256_v55, %v255_v49  ;;  %v321_v59 = vadd.f32 %v320_v58, %v319_v54 }
 0x101   :  { %415 = vpush %v257_v57 }
 0x102   :  { %417 = vpush %v297_v56 }
 0x103   :  { %419 = vpush %v321_v59 }
 0x126   :  { %v204_v17 = vpop.f32.mrf.mxu0 }
 0x127   :  { %v356_v18 = vadd.f32 %v354_v16, %v204_v17 }
 0x128   :  { %v412_v19 = vpop.f32.mrf.mxu0 }
 0x129   :  { %357 = vst [vmem:[#allocation11] sm:$0xff] %v356_v18 }
 0x12a   :  { %545 = shalt.err (!%p542_p10)
}
 0x12b   :  { %367 = dma.vmem_to_hbm [thread:$0]  %s365_s18, 128, %s751_s7, [#allocation5]   ;;  %v214_v20 = vld [vmem:[#allocation12] sm:$0x1]  ;;  %v232_v22 = vld [vmem:[#allocation14] sm:$0x1] }
 0x12c   :  { %s613_s23 = smov [#allocation12]   ;;  %s614_s7 = smov [#allocation14]  }
 0x12d   :  { %s374_s1 = sshll.u32 %s613_s23, 4  ;;  %s384_s25 = sshll.u32 %s614_s7, 4  ;;  %s375_s1 = int_to_ptr.vmem [resolvable:$true] %s374_s1  ;;  %s385_s25 = int_to_ptr.vmem [resolvable:$true] %s384_s25 }
 0x12e   :  { %s414_s4 = spop %413  ;;  %s554_s26 = scalar_lea.vmem %s375_s1, 16 }
 0x12f   :  { %v227_v1 = vstv %s414_s4  ;;  %p555_p11 = scmp.ne.s32.totalorder %s375_s1, %s554_s26  ;;  %s558_s27 = scalar_lea.vmem %s375_s1, 32 }
 0x130   :  { %v228_v21 = vmul.f32 -50.0, %v227_v1  ;;  %p559_p12 = scmp.lt.s32.totalorder %s375_s1, %s375_s1  ;;  %p560_p13 = scmp.lt.s32.totalorder %s558_s27, %s554_s26 }
 0x132   :  { %v229_v2 = vadd.f32 %v228_v21, %v214_v20  ;;  %s416_s21 = spop %415  ;;  %p561_p0 = por %p560_p13, %p559_p12 }
 0x133   :  { %v259_v23 = vstv %s416_s21  ;;  %s418_s22 = spop %417 }
 0x134   :  { %231 = vst.msk [vmem:[#allocation12] sm:$0x1] %vm129_vm6, %v229_v2  ;;  %v260_v24 = vadd.f32 %v259_v23, %v232_v22  ;;  %v299_v25 = vstv %s418_s22  ;;  %s420_s24 = spop %419  ;;  %p562_p1 = pnand %p561_p0, %p555_p11 }
 0x135   :  { %v300_v26 = vmul.f32 -50.0, %v299_v25  ;;  %v323_v29 = vstv %s420_s24 }
 0x136   :  { %261 = vst.msk [vmem:[#allocation14] sm:$0x1] %vm129_vm6, %v260_v24 }
 0x13b   :  { %v286_v27 = vld [vmem:[#allocation12] sm:$0x1] }
 0x13c   :  { %v301_v7 = vadd.f32 %v300_v26, %v286_v27 }
 0x13d   :  { %v304_v28 = vld [vmem:[#allocation14] sm:$0x1] }
 0x13e   :  { %303 = vst.msk [vmem:[#allocation12] sm:$0x1] %vm129_vm6, %v301_v7  ;;  %v324_v30 = vadd.f32 %v323_v29, %v304_v28 }
 0x13f   :  { %565 = shalt.err (!%p562_p1)
}
 0x140   :  { %377 = dma.vmem_to_hbm [thread:$0]  %s375_s1, 16, %s752_s8, [#allocation13]   ;;  %325 = vst.msk [vmem:[#allocation14] sm:$0x1] %vm129_vm6, %v324_v30 }
 0x141   :  { %s574_s2 = scalar_lea.vmem %s385_s25, 16  ;;  %s578_s3 = scalar_lea.vmem %s385_s25, 32 }
 0x142   :  { %p575_p2 = scmp.ne.s32.totalorder %s385_s25, %s574_s2  ;;  %p579_p3 = scmp.lt.s32.totalorder %s385_s25, %s385_s25 }
 0x143   :  { %p580_p4 = scmp.lt.s32.totalorder %s578_s3, %s574_s2 }
 0x145   :  { %p581_p5 = por %p580_p4, %p579_p3 }
 0x147   :  { %p582_p6 = pnand %p581_p5, %p575_p2 }
 0x149   :  { %585 = shalt.err (!%p582_p6)
}
 0x14a   :  { %387 = dma.vmem_to_hbm [thread:$0]  %s385_s25, 16, %s753_s9, [#allocation13]  }
 0x14b   :  { %600 = dma.done.wait [#allocation5], 128  }
 0x14c   :  { %601 = vsyncadd [#allocation5], 4294967168 }
 0x14d   :  { %602 = dma.done.wait [#allocation13], 32  }
 0x14e   :  { %603 = vsyncadd [#allocation13], 4294967264 }
 0x14f   :  { %397 = vsyncpa [#allocation4], 1 }
 0x150   :  { %398 = vsyncpa [#allocation7], 1 }
 0x151   :  { %399 = vsyncpa [#allocation10], 1 }
 0x152   :  { %400 = vsyncpa [#allocation5], 1 }
 0x153   :  { %401 = vsyncpa [#allocation13], 1 }

</bundles_post_ra>
